<compile_context>
chip_gen: v5e
topology: v5e:2x2
jax: 0.10.0
libtpu: 0.0.40
codegen_flags: <defaults>
</compile_context>

<pallas_src>
import math

import jax
import jax.numpy as jnp
from jax import lax
from jax.experimental import pallas as pl
from jax.experimental.pallas import tpu as pltpu


# --------------------- table-resident (VMEM) fast path ----------------------


def _emb_concat_vmem_kernel(rows_ref, w_ref, out_ref):
    # rows_ref: (F, B, 1) int32 global row ids; w_ref: (V_pad, D) f32 in VMEM
    # out_ref : (B, F*D) f32
    F, B = rows_ref.shape[0], rows_ref.shape[1]
    V, D = w_ref.shape
    iota = lax.broadcasted_iota(jnp.int32, (B, V), 1)
    w = w_ref[...]
    for f in range(F):
        one_hot = (iota == rows_ref[f]).astype(w.dtype)          # (B, V)
        out_ref[:, f * D:(f + 1) * D] = jnp.dot(
            one_hot, w, preferred_element_type=jnp.float32)


def _emb_sum_vmem_kernel(rows_ref, w_ref, out_ref):
    # Global row ranges are disjoint per feature, so the feature sum is one
    # multi-hot (B, V) @ (V, D) matmul -> gather + reduction fused on the MXU.
    F, B = rows_ref.shape[0], rows_ref.shape[1]
    V, _ = w_ref.shape
    iota = lax.broadcasted_iota(jnp.int32, (B, V), 1)
    multi_hot = jnp.zeros((B, V), jnp.float32)
    for f in range(F):
        multi_hot = multi_hot + (iota == rows_ref[f]).astype(jnp.float32)
    out_ref[...] = jnp.dot(multi_hot, w_ref[...],
                           preferred_element_type=jnp.float32)


# ------------------------- HBM row-gather path -------------------------------


def _issue_row_dmas(rows_ref, w_hbm, dst_window, sems, base, n_feats, B):
    """Issue n_feats*B row DMAs (HBM -> dst) back-to-back; return descriptors.

    All SMEM row-id reads happen here, before any .wait() (avoids breaking
    sst->sld forwarding)."""
    copies = []
    for j in range(n_feats):
        for b in range(B):
            r = rows_ref[base + j * B + b]                        # SMEM scalar
            cp = pltpu.make_async_copy(
                w_hbm.at[pl.ds(r, 1), :],                         # (1, D) row
                dst_window(j, b),                                 # (1, D) slot
                sems.at[j, b])
            cp.start()
            copies.append(cp)
    return copies


def _emb_concat_hbm_kernel(rows_ref, w_hbm, out_ref, sems):
    # out_ref: (B, Fb*D) block = columns [step*Fb*D : (step+1)*Fb*D).
    # Rows are DMA'd DIRECTLY into the output block -- no scratch round trip.
    step = pl.program_id(0)
    B = out_ref.shape[0]
    Fb = sems.shape[0]
    D = w_hbm.shape[1]
    dst = lambda j, b: out_ref.at[pl.ds(b, 1), pl.ds(j * D, D)]
    copies = _issue_row_dmas(rows_ref, w_hbm, dst, sems, step * (Fb * B), Fb, B)
    for cp in copies:
        cp.wait()


def _emb_sum_hbm_kernel(rows_ref, w_hbm, out_ref, gather, sems):
    # out_ref: (B, D) resident accumulator (constant block index, "arbitrary").
    # gather : (Fb, B, D) VMEM scratch receiving this step's Fb*B rows.
    step = pl.program_id(0)
    Fb, B, _ = gather.shape
    dst = lambda j, b: gather.at[j, pl.ds(b, 1), :]
    copies = _issue_row_dmas(rows_ref, w_hbm, dst, sems, step * (Fb * B), Fb, B)

    @pl.when(step == 0)
    def _():
        out_ref[...] = jnp.zeros_like(out_ref)

    for cp in copies:
        cp.wait()
    acc = gather[0]
    for j in range(1, Fb):
        acc = acc + gather[j]
    out_ref[...] += acc


# ------------------------------- wrapper --------------------------------------

_VMEM_TABLE_BYTES_LIMIT = 8 * 1024 * 1024   # conservative for v5e/v6e/v7x
_VOCAB_PAD = 128                            # lane/MXU-friendly packed vocab


def pack_embedding_tables(weights_list, vocab_pad=_VOCAB_PAD):
    """Concatenate per-feature tables along the vocab axis and zero-pad the
    packed vocab to a multiple of `vocab_pad`. Call ONCE at init time."""
    ws = [jnp.asarray(w, jnp.float32) for w in weights_list]
    sizes = [int(w.shape[0]) for w in ws]
    d = int(ws[0].shape[1])
    total = sum(sizes)
    padded = int(pl.cdiv(total, vocab_pad)) * vocab_pad
    w_cat = jnp.concatenate(ws, axis=0)
    if padded > total:
        w_cat = jnp.concatenate(
            [w_cat, jnp.zeros((padded - total, d), jnp.float32)], axis=0)
    offsets = jnp.asarray([sum(sizes[:i]) for i in range(len(sizes))],
                          jnp.int32)
    return w_cat, offsets


def _fused_feature_count(F, max_fused):
    # Largest divisor of F that is <= max_fused (exact grid, no padding).
    for fb in range(max(1, min(F, max_fused)), 0, -1):
        if F % fb == 0:
            return fb
    return 1


def multi_embedding_forward(idx, w_cat, offsets, aggr="concat",
                            force_hbm_gather=False, max_fused_features=8):
    """idx: (B, F) int ; w_cat: (V_pad, D) f32 packed table ; offsets: (F,) int32.

    NOTE: indices must be in-range for their feature's table (as with
    torch.nn.Embedding); out-of-range indices silently gather from a
    neighboring table's rows.
    """
    if aggr not in ("concat", "sum"):
        raise NotImplementedError(
            f"multi embedding aggregation {aggr} is not currently supported.")

    B, F = idx.shape
    V_pad, D = w_cat.shape
    idx = jnp.asarray(idx, jnp.int32)
    rows_fb = (idx + offsets[None, :]).T           # (F, B) global row ids

    table_bytes = V_pad * D * w_cat.dtype.itemsize
    use_vmem_table = (not force_hbm_gather) and table_bytes <= _VMEM_TABLE_BYTES_LIMIT

    # ---------- fast path: whole table resident in VMEM, one-hot MXU gather ----------
    if use_vmem_table:
        rows3 = rows_fb.reshape(F, B, 1)
        if aggr == "concat":
            kernel = _emb_concat_vmem_kernel
            out_shape = jax.ShapeDtypeStruct((B, F * D), jnp.float32)
        else:
            kernel = _emb_sum_vmem_kernel
            out_shape = jax.ShapeDtypeStruct((B, D), jnp.float32)
        return pl.pallas_call(kernel, out_shape=out_shape)(rows3, w_cat)

    # ---------- HBM row-gather path (large vocab) ----------
    rows_flat = rows_fb.reshape(-1)                # (F*B,), feature-major
    Fb = _fused_feature_count(F, max_fused_features)
    n_steps = F // Fb
    w_spec = pl.BlockSpec(memory_space=pl.ANY)     # raw HBM ref, manual row DMAs

    if aggr == "concat":
        if n_steps > 1 and (Fb * D) % 128 != 0:
            # Full-width output block is always legal regardless of D.
            # TODO(synk): lane padding for d_out not a multiple of 128.
            Fb, n_steps = F, 1
        return pl.pallas_call(
            _emb_concat_hbm_kernel,
            out_shape=jax.ShapeDtypeStruct((B, F * D), jnp.float32),
            grid_spec=pltpu.PrefetchScalarGridSpec(
                num_scalar_prefetch=1,
                grid=(n_steps,),
                in_specs=[w_spec],
                out_specs=pl.BlockSpec((B, Fb * D), lambda s, rows: (0, s)),
                scratch_shapes=[pltpu.SemaphoreType.DMA((Fb, B))]),
            compiler_params=pltpu.CompilerParams(
                dimension_semantics=("parallel",)),
        )(rows_flat, w_cat)

    else:  # sum: resident (B, D) accumulator across the feature-block axis
        return pl.pallas_call(
            _emb_sum_hbm_kernel,
            out_shape=jax.ShapeDtypeStruct((B, D), jnp.float32),
            grid_spec=pltpu.PrefetchScalarGridSpec(
                num_scalar_prefetch=1,
                grid=(n_steps,),
                in_specs=[w_spec],
                out_specs=pl.BlockSpec((B, D), lambda s, rows: (0, 0)),
                scratch_shapes=[pltpu.VMEM((Fb, B, D), jnp.float32),
                                pltpu.SemaphoreType.DMA((Fb, B))]),
            compiler_params=pltpu.CompilerParams(
                dimension_semantics=("arbitrary",)),
        )(rows_flat, w_cat)


# ----------------------------- init + demo ------------------------------------


def init_multi_embedding(key, d_in, d_out, init=None):
    """Deterministic xavier_uniform (or zeros) init, matching the PyTorch module."""
    weights = []
    for v in d_in:
        key, sub = jax.random.split(key)
        if init == "zeros":
            w = jnp.zeros((v, d_out), jnp.float32)
        else:
            bound = math.sqrt(6.0 / (v + d_out))
            w = jax.random.uniform(sub, (v, d_out), jnp.float32, -bound, bound)
        weights.append(w)
    return weights, key


if __name__ == "__main__":
    d_in = [11, 7, 5, 6, 9, 4]   # per-feature vocab sizes (F = 6)
    d_out = 128                  # embedding dim
    B = 8                        # batch

    key = jax.random.PRNGKey(0)
    weights, key = init_multi_embedding(key, d_in, d_out)

    cols = []
    for v in d_in:
        key, sub = jax.random.split(key)
        cols.append(jax.random.randint(sub, (B, 1), 0, v, jnp.int32))
    idx = jnp.concatenate(cols, axis=1)                              # (B, F)

    # Pack + vocab-pad tables ONCE (init time), not in the forward hot path.
    w_cat, offsets = pack_embedding_tables(weights)

    ref_concat = jnp.concatenate(
        [weights[i][idx[:, i]] for i in range(len(d_in))], axis=1)
    ref_sum = sum(weights[i][idx[:, i]] for i in range(len(d_in)))

    # --- table-resident (VMEM one-hot MXU) fast path ---
    out_c = multi_embedding_forward(idx, w_cat, offsets, aggr="concat")
    jax.block_until_ready(out_c)
    assert out_c.shape == (B, len(d_in) * d_out)
    assert jnp.allclose(out_c, ref_concat, atol=1e-5), "concat (vmem) mismatch"

    out_s = multi_embedding_forward(idx, w_cat, offsets, aggr="sum")
    jax.block_until_ready(out_s)
    assert out_s.shape == (B, d_out)
    assert jnp.allclose(out_s, ref_sum, atol=1e-5), "sum (vmem) mismatch"

    # --- HBM row-gather path (forced; exercises fused multi-feature DMA grid) ---
    out_ch = multi_embedding_forward(idx, w_cat, offsets, aggr="concat",
                                     force_hbm_gather=True, max_fused_features=2)
    jax.block_until_ready(out_ch)
    assert jnp.allclose(out_ch, ref_concat, atol=1e-6), "concat (hbm) mismatch"

    out_sh = multi_embedding_forward(idx, w_cat, offsets, aggr="sum",
                                     force_hbm_gather=True, max_fused_features=2)
    jax.block_until_ready(out_sh)
    assert jnp.allclose(out_sh, ref_sum, atol=1e-5), "sum (hbm) mismatch"

    print("KERNEL_OK")
</pallas_src>

<mosaic_0001>
module attributes {stable_mosaic.version = 11 : i64} {
  func.func @_emb_concat_vmem_kernel(%arg0: memref<6x8x1xi32, #tpu.memory_space<vmem>>, %arg1: memref<128x128xf32, #tpu.memory_space<vmem>>, %arg2: memref<8x768xf32, #tpu.memory_space<vmem>>) attributes {dimension_semantics = [], scalar_prefetch = 0 : i64, scratch_operands = 0 : i64, tpu.core_type = #tpu.core_type<tc>} {
    %0 = tpu.iota {dimensions = array<i32: 1>} : vector<8x128xi32>
    %c0 = arith.constant 0 : index
    %c0_0 = arith.constant 0 : index
    %1 = vector.load %arg1[%c0, %c0_0] : memref<128x128xf32, #tpu.memory_space<vmem>>, vector<128x128xf32>
    %c0_1 = arith.constant 0 : index
    %c0_2 = arith.constant 0 : index
    %c0_3 = arith.constant 0 : index
    %2 = vector.load %arg0[%c0_1, %c0_2, %c0_3] : memref<6x8x1xi32, #tpu.memory_space<vmem>>, vector<1x8x1xi32>
    %3 = vector.shape_cast %2 : vector<1x8x1xi32> to vector<8x1xi32>
    %4 = vector.broadcast %3 : vector<8x1xi32> to vector<8x128xi32>
    %5 = arith.cmpi eq, %0, %4 : vector<8x128xi32>
    %6 = arith.extui %5 : vector<8x128xi1> to vector<8x128xi32>
    %7 = arith.sitofp %6 : vector<8x128xi32> to vector<8x128xf32>
    %cst = arith.constant dense<0.000000e+00> : vector<8x128xf32>
    %8 = tpu.matmul %7, %1, %cst {dimension_numbers = #tpu.dot_dimension_numbers<[1], [0], [0], [1], [0, 0, 1, 1], [], []>} : vector<8x128xf32>, vector<128x128xf32>, vector<8x128xf32> -> vector<8x128xf32>
    %c0_4 = arith.constant 0 : index
    %c0_5 = arith.constant 0 : index
    %9 = vector.load %arg2[%c0_4, %c0_5] : memref<8x768xf32, #tpu.memory_space<vmem>>, vector<8x128xf32>
    tpu.vector_store %arg2[%c0_4, %c0_5], %8 {strides = array<i32>} : memref<8x768xf32, #tpu.memory_space<vmem>>, vector<8x128xf32>,
    %c1 = arith.constant 1 : index
    %c0_6 = arith.constant 0 : index
    %c0_7 = arith.constant 0 : index
    %10 = vector.load %arg0[%c1, %c0_6, %c0_7] : memref<6x8x1xi32, #tpu.memory_space<vmem>>, vector<1x8x1xi32>
    %11 = vector.shape_cast %10 : vector<1x8x1xi32> to vector<8x1xi32>
    %12 = vector.broadcast %11 : vector<8x1xi32> to vector<8x128xi32>
    %13 = arith.cmpi eq, %0, %12 : vector<8x128xi32>
    %14 = arith.extui %13 : vector<8x128xi1> to vector<8x128xi32>
    %15 = arith.sitofp %14 : vector<8x128xi32> to vector<8x128xf32>
    %cst_8 = arith.constant dense<0.000000e+00> : vector<8x128xf32>
    %16 = tpu.matmul %15, %1, %cst_8 {dimension_numbers = #tpu.dot_dimension_numbers<[1], [0], [0], [1], [0, 0, 1, 1], [], []>} : vector<8x128xf32>, vector<128x128xf32>, vector<8x128xf32> -> vector<8x128xf32>
    %c0_9 = arith.constant 0 : index
    %c128 = arith.constant 128 : index
    %17 = vector.load %arg2[%c0_9, %c128] : memref<8x768xf32, #tpu.memory_space<vmem>>, vector<8x128xf32>
    tpu.vector_store %arg2[%c0_9, %c128], %16 {strides = array<i32>} : memref<8x768xf32, #tpu.memory_space<vmem>>, vector<8x128xf32>,
    %c2 = arith.constant 2 : index
    %c0_10 = arith.constant 0 : index
    %c0_11 = arith.constant 0 : index
    %18 = vector.load %arg0[%c2, %c0_10, %c0_11] : memref<6x8x1xi32, #tpu.memory_space<vmem>>, vector<1x8x1xi32>
    %19 = vector.shape_cast %18 : vector<1x8x1xi32> to vector<8x1xi32>
    %20 = vector.broadcast %19 : vector<8x1xi32> to vector<8x128xi32>
    %21 = arith.cmpi eq, %0, %20 : vector<8x128xi32>
    %22 = arith.extui %21 : vector<8x128xi1> to vector<8x128xi32>
    %23 = arith.sitofp %22 : vector<8x128xi32> to vector<8x128xf32>
    %cst_12 = arith.constant dense<0.000000e+00> : vector<8x128xf32>
    %24 = tpu.matmul %23, %1, %cst_12 {dimension_numbers = #tpu.dot_dimension_numbers<[1], [0], [0], [1], [0, 0, 1, 1], [], []>} : vector<8x128xf32>, vector<128x128xf32>, vector<8x128xf32> -> vector<8x128xf32>
    %c0_13 = arith.constant 0 : index
    %c256 = arith.constant 256 : index
    %25 = vector.load %arg2[%c0_13, %c256] : memref<8x768xf32, #tpu.memory_space<vmem>>, vector<8x128xf32>
    tpu.vector_store %arg2[%c0_13, %c256], %24 {strides = array<i32>} : memref<8x768xf32, #tpu.memory_space<vmem>>, vector<8x128xf32>,
    %c3 = arith.constant 3 : index
    %c0_14 = arith.constant 0 : index
    %c0_15 = arith.constant 0 : index
    %26 = vector.load %arg0[%c3, %c0_14, %c0_15] : memref<6x8x1xi32, #tpu.memory_space<vmem>>, vector<1x8x1xi32>
    %27 = vector.shape_cast %26 : vector<1x8x1xi32> to vector<8x1xi32>
    %28 = vector.broadcast %27 : vector<8x1xi32> to vector<8x128xi32>
    %29 = arith.cmpi eq, %0, %28 : vector<8x128xi32>
    %30 = arith.extui %29 : vector<8x128xi1> to vector<8x128xi32>
    %31 = arith.sitofp %30 : vector<8x128xi32> to vector<8x128xf32>
    %cst_16 = arith.constant dense<0.000000e+00> : vector<8x128xf32>
    %32 = tpu.matmul %31, %1, %cst_16 {dimension_numbers = #tpu.dot_dimension_numbers<[1], [0], [0], [1], [0, 0, 1, 1], [], []>} : vector<8x128xf32>, vector<128x128xf32>, vector<8x128xf32> -> vector<8x128xf32>
    %c0_17 = arith.constant 0 : index
    %c384 = arith.constant 384 : index
    %33 = vector.load %arg2[%c0_17, %c384] : memref<8x768xf32, #tpu.memory_space<vmem>>, vector<8x128xf32>
    tpu.vector_store %arg2[%c0_17, %c384], %32 {strides = array<i32>} : memref<8x768xf32, #tpu.memory_space<vmem>>, vector<8x128xf32>,
    %c4 = arith.constant 4 : index
    %c0_18 = arith.constant 0 : index
    %c0_19 = arith.constant 0 : index
    %34 = vector.load %arg0[%c4, %c0_18, %c0_19] : memref<6x8x1xi32, #tpu.memory_space<vmem>>, vector<1x8x1xi32>
    %35 = vector.shape_cast %34 : vector<1x8x1xi32> to vector<8x1xi32>
    %36 = vector.broadcast %35 : vector<8x1xi32> to vector<8x128xi32>
    %37 = arith.cmpi eq, %0, %36 : vector<8x128xi32>
    %38 = arith.extui %37 : vector<8x128xi1> to vector<8x128xi32>
    %39 = arith.sitofp %38 : vector<8x128xi32> to vector<8x128xf32>
    %cst_20 = arith.constant dense<0.000000e+00> : vector<8x128xf32>
    %40 = tpu.matmul %39, %1, %cst_20 {dimension_numbers = #tpu.dot_dimension_numbers<[1], [0], [0], [1], [0, 0, 1, 1], [], []>} : vector<8x128xf32>, vector<128x128xf32>, vector<8x128xf32> -> vector<8x128xf32>
    %c0_21 = arith.constant 0 : index
    %c512 = arith.constant 512 : index
    %41 = vector.load %arg2[%c0_21, %c512] : memref<8x768xf32, #tpu.memory_space<vmem>>, vector<8x128xf32>
    tpu.vector_store %arg2[%c0_21, %c512], %40 {strides = array<i32>} : memref<8x768xf32, #tpu.memory_space<vmem>>, vector<8x128xf32>,
    %c5 = arith.constant 5 : index
    %c0_22 = arith.constant 0 : index
    %c0_23 = arith.constant 0 : index
    %42 = vector.load %arg0[%c5, %c0_22, %c0_23] : memref<6x8x1xi32, #tpu.memory_space<vmem>>, vector<1x8x1xi32>
    %43 = vector.shape_cast %42 : vector<1x8x1xi32> to vector<8x1xi32>
    %44 = vector.broadcast %43 : vector<8x1xi32> to vector<8x128xi32>
    %45 = arith.cmpi eq, %0, %44 : vector<8x128xi32>
    %46 = arith.extui %45 : vector<8x128xi1> to vector<8x128xi32>
    %47 = arith.sitofp %46 : vector<8x128xi32> to vector<8x128xf32>
    %cst_24 = arith.constant dense<0.000000e+00> : vector<8x128xf32>
    %48 = tpu.matmul %47, %1, %cst_24 {dimension_numbers = #tpu.dot_dimension_numbers<[1], [0], [0], [1], [0, 0, 1, 1], [], []>} : vector<8x128xf32>, vector<128x128xf32>, vector<8x128xf32> -> vector<8x128xf32>
    %c0_25 = arith.constant 0 : index
    %c640 = arith.constant 640 : index
    %49 = vector.load %arg2[%c0_25, %c640] : memref<8x768xf32, #tpu.memory_space<vmem>>, vector<8x128xf32>
    tpu.vector_store %arg2[%c0_25, %c640], %48 {strides = array<i32>} : memref<8x768xf32, #tpu.memory_space<vmem>>, vector<8x128xf32>,
    return
  }
}

</mosaic_0001>

<bundles_post_ra>
// kernel: tpu_custom_call.1
= control target key start
LH: loop header
LB: loop body
LE: loop exit
PB: predicated region body
PF: predicated region fallthrough
CT: control target
= control target key end

     0   :  { %7 = vsyncpa [#allocation3], 0  ;;  %s431_s0 = inlined_call_operand.vmem [shape: s32[6,8,1], index: 0, kind: input, shape index: {}]   ;;  %s432_s1 = inlined_call_operand.hbm [shape: f32[128,128], index: 1, kind: input, shape index: {}]   ;;  %s433_s2 = inlined_call_operand.hbm [shape: f32[8,768], index: 2, kind: output, shape index: {}]  }
   0x1   :  { %8 = vsyncpa [#allocation4], 0  ;;  %s15_s11 = sshll.u32 %s432_s1, 4  ;;  %s314_s12 = smov [#allocation2]   ;;  %s16_s11 = int_to_ptr.hbm [resolvable:$true] %s15_s11 }
   0x2   :  { %s17_s13 = sshll.u32 %s314_s12, 4  ;;  %s315_s14 = smov 128   ;;  %s18_s13 = int_to_ptr.vmem [resolvable:$true] %s17_s13 }
   0x3   :  { %s316_s15 = smov 8  }
   0x4   :  { %23 = dma.hbm_to_vmem [thread:$0]  %s16_s11, 2048, %s18_s13, [#allocation3], %s315_s14, %s315_s14, %s316_s15  }
   0x5   :  { %310 = dma.done.wait [#allocation3], 2048  }
   0x6   :  { %311 = vsyncadd [#allocation3], 4294965248  ;;  %v317_v0 = vmov 0   ;;  %v241_v1 = vld [vmem:[%s431_s0 + $0x10] sm:$0xff]  ;;  %v46_v2 = vld [vmem:[%s431_s0] sm:$0xff]  ;;  %v28_v23 = vlaneseq  ;;  %v318_v27 = vmov 1.0  }
   0x7   :  { %260 = vset.pattern.permute.xlu1 %v317_v0  ;;  %259 = vset.pattern.permute.xlu0 %v317_v0  ;;  %v247_v3 = vld [vmem:[%s431_s0 + $0x20] sm:$0xff]  ;;  %v347_v4 = vld [vmem:[#allocation2 + $0x78] sm:$0xff]  ;;  %v349_v5 = vld [vmem:[#allocation2 + $0x70] sm:$0xff]  ;;  %s226_s30 = sshll.u32 %s433_s2, 4  ;;  %s227_s30 = int_to_ptr.hbm [resolvable:$true] %s226_s30 }
   0x8   :  { %261 = vset.pattern.permute.xlu2 %v317_v0  ;;  %106 = vperm.xlu1 %260, %v241_v1   ;;  %v353_v6 = vld [vmem:[#allocation2 + $0x68] sm:$0xff]  ;;  %v244_v7 = vld [vmem:[%s431_s0 + $0x18] sm:$0xff]  ;;  %v371_v10 = vld [vmem:[#allocation2 + $0x60] sm:$0xff]  ;;  %v29_v24 = vand.u32 127, %v28_v23 }
   0x9   :  { %48 = vperm.xlu0 %259, %v46_v2   ;;  %164 = vperm.xlu2 %261, %v247_v3   ;;  %v238_v8 = vld [vmem:[%s431_s0 + $0x8] sm:$0xff]  ;;  %v376_v11 = vld [vmem:[#allocation2 + $0x58] sm:$0xff]  ;;  %v379_v12 = vld [vmem:[#allocation2 + $0x50] sm:$0xff] }
   0xa   :  { %53 = vmatpush.msra.mxu0 %v347_v4  ;;  %82 = vmatpush.msra.mxu1 %v347_v4  ;;  %v250_v9 = vld [vmem:[%s431_s0 + $0x28] sm:$0xff]  ;;  %v391_v14 = vld [vmem:[#allocation2 + $0x40] sm:$0xff]  ;;  %v397_v15 = vld [vmem:[#allocation2 + $0x38] sm:$0xff]  ;;  %s319_s0 = smov [#allocation5]  }
   0xb   :  { %111 = vmatpush.msra.mxu2 %v347_v4  ;;  %140 = vmatpush.msra.mxu3 %v347_v4  ;;  %v385_v13 = vld [vmem:[#allocation2 + $0x48] sm:$0xff]  ;;  %v36_v16 = vld [vmem:[#allocation2 + $0x30] sm:$0xff]  ;;  %v34_v18 = vld [vmem:[#allocation2 + $0x20] sm:$0xff]  ;;  %s224_s27 = sshll.u32 %s319_s0, 4  ;;  %s225_s27 = int_to_ptr.vmem [resolvable:$true] %s224_s27 }
   0xc   :  { %54 = vmatpush.msra.mxu0 %v349_v5  ;;  %83 = vmatpush.msra.mxu1 %v349_v5  ;;  %v35_v17 = vld [vmem:[#allocation2 + $0x28] sm:$0xff]  ;;  %v33_v19 = vld [vmem:[#allocation2 + $0x18] sm:$0xff]  ;;  %v32_v20 = vld [vmem:[#allocation2 + $0x10] sm:$0xff] }
   0xd   :  { %112 = vmatpush.msra.mxu2 %v349_v5  ;;  %141 = vmatpush.msra.mxu3 %v349_v5  ;;  %v31_v21 = vld [vmem:[#allocation2 + $0x8] sm:$0xff]  ;;  %v30_v22 = vld [vmem:[#allocation2] sm:$0xff] }
   0xe   :  { %55 = vmatpush.msra.mxu0 %v353_v6  ;;  %84 = vmatpush.msra.mxu1 %v353_v6 }
   0xf   :  { %113 = vmatpush.msra.mxu2 %v353_v6  ;;  %142 = vmatpush.msra.mxu3 %v353_v6 }
  0x10   :  { %135 = vperm.xlu1 %260, %v244_v7   ;;  %56 = vmatpush.msra.mxu0 %v371_v10 }
  0x11   :  { %77 = vperm.xlu0 %259, %v238_v8   ;;  %193 = vperm.xlu2 %261, %v250_v9  }
  0x12   :  { %85 = vmatpush.msra.mxu1 %v371_v10  ;;  %114 = vmatpush.msra.mxu2 %v371_v10 }
  0x13   :  { %57 = vmatpush.msra.mxu0 %v376_v11  ;;  %143 = vmatpush.msra.mxu3 %v371_v10 }
  0x14   :  { %86 = vmatpush.msra.mxu1 %v376_v11  ;;  %115 = vmatpush.msra.mxu2 %v376_v11 }
  0x15   :  { %58 = vmatpush.msra.mxu0 %v379_v12  ;;  %144 = vmatpush.msra.mxu3 %v376_v11 }
  0x16   :  { %87 = vmatpush.msra.mxu1 %v379_v12  ;;  %116 = vmatpush.msra.mxu2 %v379_v12 }
  0x17   :  { %59 = vmatpush.msra.mxu0 %v385_v13  ;;  %145 = vmatpush.msra.mxu3 %v379_v12 }
  0x18   :  { %88 = vmatpush.msra.mxu1 %v385_v13  ;;  %117 = vmatpush.msra.mxu2 %v385_v13 }
  0x19   :  { %60 = vmatpush.msra.mxu0 %v391_v14  ;;  %146 = vmatpush.msra.mxu3 %v385_v13 }
  0x1a   :  { %89 = vmatpush.msra.mxu1 %v391_v14  ;;  %118 = vmatpush.msra.mxu2 %v391_v14 }
  0x1b   :  { %61 = vmatpush.msra.mxu0 %v397_v15  ;;  %147 = vmatpush.msra.mxu3 %v391_v14 }
  0x1c   :  { %90 = vmatpush.msra.mxu1 %v397_v15  ;;  %119 = vmatpush.msra.mxu2 %v397_v15 }
  0x1d   :  { %62 = vmatpush.msra.mxu0 %v36_v16  ;;  %148 = vmatpush.msra.mxu3 %v397_v15 }
  0x1e   :  { %91 = vmatpush.msra.mxu1 %v36_v16  ;;  %120 = vmatpush.msra.mxu2 %v36_v16 }
  0x1f   :  { %63 = vmatpush.msra.mxu0 %v35_v17  ;;  %149 = vmatpush.msra.mxu3 %v36_v16 }
  0x20   :  { %92 = vmatpush.msra.mxu1 %v35_v17  ;;  %121 = vmatpush.msra.mxu2 %v35_v17 }
  0x21   :  { %64 = vmatpush.msra.mxu0 %v34_v18  ;;  %150 = vmatpush.msra.mxu3 %v35_v17 }
  0x22   :  { %93 = vmatpush.msra.mxu1 %v34_v18  ;;  %122 = vmatpush.msra.mxu2 %v34_v18 }
  0x23   :  { %65 = vmatpush.msra.mxu0 %v33_v19  ;;  %151 = vmatpush.msra.mxu3 %v34_v18 }
  0x24   :  { %94 = vmatpush.msra.mxu1 %v33_v19  ;;  %123 = vmatpush.msra.mxu2 %v33_v19 }
  0x25   :  { %66 = vmatpush.msra.mxu0 %v32_v20  ;;  %152 = vmatpush.msra.mxu3 %v33_v19 }
  0x26   :  { %95 = vmatpush.msra.mxu1 %v32_v20  ;;  %124 = vmatpush.msra.mxu2 %v32_v20 }
  0x27   :  { %67 = vmatpush.msra.mxu0 %v31_v21  ;;  %153 = vmatpush.msra.mxu3 %v32_v20 }
  0x28   :  { %96 = vmatpush.msra.mxu1 %v31_v21  ;;  %125 = vmatpush.msra.mxu2 %v31_v21 }
  0x29   :  { %68 = vmatpush.msra.mxu0 %v30_v22  ;;  %154 = vmatpush.msra.mxu3 %v31_v21 }
  0x2a   :  { %97 = vmatpush.msra.mxu1 %v30_v22  ;;  %126 = vmatpush.msra.mxu2 %v30_v22 }
  0x2b   :  { %169 = vmatpush.msrb.mxu0 %v347_v4  ;;  %155 = vmatpush.msra.mxu3 %v30_v22 }
  0x2c   :  { %198 = vmatpush.msrb.mxu1 %v347_v4 }
  0x2d   :  { %170 = vmatpush.msrb.mxu0 %v349_v5 }
  0x2e   :  { %199 = vmatpush.msrb.mxu1 %v349_v5 }
  0x2f   :  { %171 = vmatpush.msrb.mxu0 %v353_v6 }
  0x30   :  { %200 = vmatpush.msrb.mxu1 %v353_v6 }
  0x31   :  { %172 = vmatpush.msrb.mxu0 %v371_v10 }
  0x32   :  { %201 = vmatpush.msrb.mxu1 %v371_v10 }
  0x33   :  { %173 = vmatpush.msrb.mxu0 %v376_v11 }
  0x34   :  { %202 = vmatpush.msrb.mxu1 %v376_v11 }
  0x35   :  { %174 = vmatpush.msrb.mxu0 %v379_v12 }
  0x36   :  { %203 = vmatpush.msrb.mxu1 %v379_v12 }
  0x37   :  { %175 = vmatpush.msrb.mxu0 %v385_v13 }
  0x38   :  { %204 = vmatpush.msrb.mxu1 %v385_v13 }
  0x39   :  { %176 = vmatpush.msrb.mxu0 %v391_v14 }
  0x3a   :  { %205 = vmatpush.msrb.mxu1 %v391_v14 }
  0x3b   :  { %177 = vmatpush.msrb.mxu0 %v397_v15 }
  0x3c   :  { %206 = vmatpush.msrb.mxu1 %v397_v15 }
  0x3d   :  { %178 = vmatpush.msrb.mxu0 %v36_v16 }
  0x3e   :  { %207 = vmatpush.msrb.mxu1 %v36_v16 }
  0x3f   :  { %179 = vmatpush.msrb.mxu0 %v35_v17 }
  0x40   :  { %208 = vmatpush.msrb.mxu1 %v35_v17 }
  0x41   :  { %180 = vmatpush.msrb.mxu0 %v34_v18 }
  0x42   :  { %209 = vmatpush.msrb.mxu1 %v34_v18 }
  0x43   :  { %181 = vmatpush.msrb.mxu0 %v33_v19 }
  0x44   :  { %210 = vmatpush.msrb.mxu1 %v33_v19 }
  0x45   :  { %182 = vmatpush.msrb.mxu0 %v32_v20 }
  0x46   :  { %211 = vmatpush.msrb.mxu1 %v32_v20 }
  0x47   :  { %183 = vmatpush.msrb.mxu0 %v31_v21 }
  0x48   :  { %212 = vmatpush.msrb.mxu1 %v31_v21 }
  0x49   :  { %184 = vmatpush.msrb.mxu0 %v30_v22 }
  0x4a   :  { %213 = vmatpush.msrb.mxu1 %v30_v22 }
  0x63   :  { %v165_v28 = vpop.permute.xlu2 %164 }
  0x64   :  { %vm166_vm2 = vcmp.eq.s32.totalorder %v29_v24, %v165_v28 }
  0x6b   :  { %v194_v31 = vpop.permute.xlu2 %193 }
  0x6c   :  { %vm195_vm5 = vcmp.eq.s32.totalorder %v29_v24, %v194_v31 }
  0x7a   :  { %v107_v25 = vpop.permute.xlu1 %106 }
  0x7b   :  { %v49_v26 = vpop.permute.xlu0 %48  ;;  %vm108_vm0 = vcmp.eq.s32.totalorder %v29_v24, %v107_v25 }
  0x7c   :  { %vm50_vm1 = vcmp.eq.s32.totalorder %v29_v24, %v49_v26  ;;  %243 = vmatmul.msk.f32.vlgmr.msra.gmra.mxu2 %vm108_vm0, %v318_v27 }
  0x7d   :  { %237 = vmatmul.msk.f32.vlgmr.msra.gmra.mxu0 %vm50_vm1, %v318_v27 }
  0x82   :  { %v136_v29 = vpop.permute.xlu1 %135 }
  0x83   :  { %v78_v30 = vpop.permute.xlu0 %77  ;;  %vm137_vm3 = vcmp.eq.s32.totalorder %v29_v24, %v136_v29 }
  0x84   :  { %vm79_vm4 = vcmp.eq.s32.totalorder %v29_v24, %v78_v30  ;;  %246 = vmatmul.msk.f32.vlgmr.msra.gmra.mxu3 %vm137_vm3, %v318_v27 }
  0x85   :  { %240 = vmatmul.msk.f32.vlgmr.msra.gmra.mxu1 %vm79_vm4, %v318_v27  ;;  %249 = vmatmul.msk.f32.vlgmr.msrb.gmra.mxu0 %vm166_vm2, %v318_v27 }
  0x8d   :  { %252 = vmatmul.msk.f32.vlgmr.msrb.gmra.mxu1 %vm195_vm5, %v318_v27 }
  0xfa   :  { %v70_v32 = vpop.f32.mrf.mxu0 }
  0xfb   :  { %73 = vst [vmem:[#allocation5] sm:$0xff] %v70_v32 }
  0xff   :  { %v128_v33 = vpop.f32.mrf.mxu2 }
 0x100   :  { %131 = vst [vmem:[#allocation5 + $0x10] sm:$0xff] %v128_v33 }
 0x102   :  { %v99_v34 = vpop.f32.mrf.mxu1  ;;  %v186_v35 = vpop.f32.mrf.mxu0 }
 0x103   :  { %102 = vst [vmem:[#allocation5 + $0x8] sm:$0xff] %v99_v34 }
 0x104   :  { %189 = vst [vmem:[#allocation5 + $0x20] sm:$0xff] %v186_v35 }
 0x107   :  { %v157_v36 = vpop.f32.mrf.mxu3 }
 0x108   :  { %160 = vst [vmem:[#allocation5 + $0x18] sm:$0xff] %v157_v36 }
 0x10a   :  { %v215_v37 = vpop.f32.mrf.mxu1 }
 0x10b   :  { %218 = vst [vmem:[#allocation5 + $0x28] sm:$0xff] %v215_v37 }
 0x10c   :  { %229 = dma.vmem_to_hbm [thread:$0]  %s225_s27, 768, %s227_s30, [#allocation4]  }
 0x10d   :  { %312 = dma.done.wait [#allocation4], 768  }
 0x10e   :  { %313 = vsyncadd [#allocation4], 4294966528 }
 0x10f   :  { %234 = vsyncpa [#allocation3], 1 }
 0x110   :  { %235 = vsyncpa [#allocation4], 1 }

</bundles_post_ra>
